<compile_context>
chip_gen: v6e
topology: v6e:2x2x1
jax: 0.10.0
libtpu: 0.0.40
codegen_flags: <defaults>
</compile_context>

<pallas_src>
import jax
import jax.numpy as jnp
from jax.experimental import pallas as pl
from jax.experimental.pallas import tpu as pltpu

DYN_IN = 6            # dyn_in_dim = 4 + 2
REL_IN = 12           # rel_in_dim = 8 + 4
MSG_DIM = 16          # frel output width
DELTA_DIM = 6         # delta_dim = 3 + 3
OUT_PAD = 128         # lane-dense padded output width
HID = (128, 64, 32, 16)

_ROW_TILE_TARGET = 1024
_VMEM_LIMIT = 64 * 1024 * 1024


# --------------------------------------------------------------------------
# Parameter init (deterministic, PyTorch-Linear-style uniform init), f32.
# --------------------------------------------------------------------------
def make_mlp_params(key, in_dim, out_dim):
    dims = (in_dim,) + HID + (out_dim,)
    ws, bs = [], []
    for i in range(len(dims) - 1):
        key, kw, kb = jax.random.split(key, 3)
        bound = 1.0 / jnp.sqrt(jnp.float32(dims[i]))
        ws.append(jax.random.uniform(kw, (dims[i], dims[i + 1]),
                                     jnp.float32, -bound, bound))
        bs.append(jax.random.uniform(kb, (1, dims[i + 1]),
                                     jnp.float32, -bound, bound))
    return ws, bs


# --------------------------------------------------------------------------
# Helpers
# --------------------------------------------------------------------------
def _round_up(x, m):
    return ((x + m - 1) // m) * m


def _choose_tiles(dim, cap):
    """Return (padded_dim, tile).  tile is a multiple of 8 (and of 128 in the
    multi-tile branch so it may sit on a block's lane axis)."""
    d8 = _round_up(dim, 8)
    if d8 <= cap:
        return d8, d8
    return _round_up(dim, cap), cap


def _const_spec(a):
    """Full-block spec with a constant index map (weight fetched once)."""
    return pl.BlockSpec(a.shape, lambda *_args, _nd=a.ndim: (0,) * _nd)


# --------------------------------------------------------------------------
# Kernel 1: frel MLP on the flattened (edge-major) slab
# --------------------------------------------------------------------------
def _frel_kernel(rel_ref,
                 fw0, fb0, fw1, fb1, fw2, fb2, fw3, fb3, fw4, fb4,
                 msg_ref):
    def dense(x, w_ref, b_ref, relu):
        y = jnp.dot(x.astype(jnp.bfloat16), w_ref[...],
                    preferred_element_type=jnp.float32) + b_ref[...]
        return jnp.maximum(y, 0.0) if relu else y

    h = dense(rel_ref[...], fw0, fb0, True)
    h = dense(h, fw1, fb1, True)
    h = dense(h, fw2, fb2, True)
    h = dense(h, fw3, fb3, True)
    msg_ref[...] = dense(h, fw4, fb4, False).astype(msg_ref.dtype)


# --------------------------------------------------------------------------
# Kernel 2: scatter-add as a tiled matmul  recv(N,E) @ msg_folded(E, B*16)
# (edge axis is the reduction; output block stays resident and accumulates)
# --------------------------------------------------------------------------
def _scatter_kernel(recv_ref, msg_ref, agg_ref):
    @pl.when(pl.program_id(1) == 0)
    def _init():
        agg_ref[...] = jnp.zeros_like(agg_ref)

    agg_ref[...] += jnp.dot(recv_ref[...], msg_ref[...],
                            preferred_element_type=jnp.float32)


# --------------------------------------------------------------------------
# Kernel 3: fdyn MLP on the flattened (node-major) slab, lane-dense output
# --------------------------------------------------------------------------
def _fdyn_kernel(dyn_ref, agg_ref,
                 dw0d, dw0a, db0, dw1, db1, dw2, db2, dw3, db3, dw4, db4,
                 out_ref):
    def dense(x, w_ref, b_ref, relu):
        y = jnp.dot(x.astype(jnp.bfloat16), w_ref[...],
                    preferred_element_type=jnp.float32) + b_ref[...]
        return jnp.maximum(y, 0.0) if relu else y

    # concat([dyn, agg]) @ W0  ==  dyn @ W0[:6] + agg @ W0[6:]
    g = (jnp.dot(dyn_ref[...], dw0d[...], preferred_element_type=jnp.float32)
         + jnp.dot(agg_ref[...], dw0a[...], preferred_element_type=jnp.float32)
         + db0[...])
    g = jnp.maximum(g, 0.0)
    g = dense(g, dw1, db1, True)
    g = dense(g, dw2, db2, True)
    g = dense(g, dw3, db3, True)
    out_ref[...] = dense(g, dw4, db4, False)       # (rows, 128) lane-dense


# --------------------------------------------------------------------------
# Wrapper
# --------------------------------------------------------------------------
def interaction_network(dyn_feats, rel_feats, senders, receivers,
                        frel_w, frel_b, fdyn_w, fdyn_b):
    del senders  # unused by the reference forward (matches PyTorch code)
    B, N, _ = dyn_feats.shape
    E = rel_feats.shape[1]

    cap = max(128, (_ROW_TILE_TARGET // B) // 128 * 128)
    E_pad, TE = _choose_tiles(E, cap)
    N_pad, TN = _choose_tiles(N, cap)

    # ---- layouts: edge-major / node-major slabs (batch fast along rows) ----
    rel_t = jnp.pad(jnp.transpose(rel_feats, (1, 0, 2)),
                    ((0, E_pad - E), (0, 0), (0, 0)))          # (E_pad, B, 12)
    rel_flat = rel_t.reshape(E_pad * B, REL_IN).astype(jnp.bfloat16)

    dyn_t = jnp.pad(jnp.transpose(dyn_feats, (1, 0, 2)),
                    ((0, N_pad - N), (0, 0), (0, 0)))          # (N_pad, B, 6)
    dyn_rows = dyn_t.reshape(N_pad * B, DYN_IN).astype(jnp.bfloat16)

    # one-hot scatter matrix shared across batch (0/1 exact in bf16);
    # padded edge columns / node rows stay zero so padding never contributes.
    recv_onehot = jnp.zeros((N_pad, E_pad), jnp.bfloat16).at[
        receivers, jnp.arange(E)].set(1.0)

    # ---- weights: bf16 for the MXU, f32 biases; split / pad as needed ----
    frel_args = []
    for w, b in zip(frel_w, frel_b):
        frel_args += [w.astype(jnp.bfloat16), b]

    dw0d = fdyn_w[0][:DYN_IN].astype(jnp.bfloat16)
    dw0a = fdyn_w[0][DYN_IN:].astype(jnp.bfloat16)
    dw4p = jnp.pad(fdyn_w[4],
                   ((0, 0), (0, OUT_PAD - DELTA_DIM))).astype(jnp.bfloat16)
    db4p = jnp.pad(fdyn_b[4], ((0, 0), (0, OUT_PAD - DELTA_DIM)))
    fdyn_args = [dw0d, dw0a, fdyn_b[0]]
    for w, b in zip(fdyn_w[1:4], fdyn_b[1:4]):
        fdyn_args += [w.astype(jnp.bfloat16), b]
    fdyn_args += [dw4p, db4p]

    def params(sem):
        return pltpu.CompilerParams(dimension_semantics=sem,
                                    vmem_limit_bytes=_VMEM_LIMIT)

    # ---- kernel 1: frel over row tiles of the flattened edge slab ----
    msg = pl.pallas_call(
        _frel_kernel,
        out_shape=jax.ShapeDtypeStruct((E_pad * B, MSG_DIM), jnp.bfloat16),
        grid=(E_pad // TE,),
        in_specs=[pl.BlockSpec((TE * B, REL_IN), lambda e: (e, 0))]
                 + [_const_spec(a) for a in frel_args],
        out_specs=pl.BlockSpec((TE * B, MSG_DIM), lambda e: (e, 0)),
        compiler_params=params(("parallel",)),
    )(rel_flat, *frel_args)

    # fold batch into lanes: (E_pad*B, 16) -> (E_pad, B*16) is contiguous.
    msg_folded = msg.reshape(E_pad, B * MSG_DIM)

    # ---- kernel 2: scatter-add (index_add_) as a lane-folded matmul ----
    agg_folded = pl.pallas_call(
        _scatter_kernel,
        out_shape=jax.ShapeDtypeStruct((N_pad, B * MSG_DIM), jnp.float32),
        grid=(N_pad // TN, E_pad // TE),
        in_specs=[pl.BlockSpec((TN, TE), lambda i, k: (i, k)),
                  pl.BlockSpec((TE, B * MSG_DIM), lambda i, k: (k, 0))],
        out_specs=pl.BlockSpec((TN, B * MSG_DIM), lambda i, k: (i, 0)),
        compiler_params=params(("parallel", "arbitrary")),
    )(recv_onehot, msg_folded)

    # unfold to per-(node, batch) rows: (N_pad, B*16) -> (N_pad*B, 16).
    agg_rows = agg_folded.reshape(N_pad * B, MSG_DIM).astype(jnp.bfloat16)

    # ---- kernel 3: fdyn over row tiles of the flattened node slab ----
    delta_flat = pl.pallas_call(
        _fdyn_kernel,
        out_shape=jax.ShapeDtypeStruct((N_pad * B, OUT_PAD), jnp.float32),
        grid=(N_pad // TN,),
        in_specs=[pl.BlockSpec((TN * B, DYN_IN), lambda i: (i, 0)),
                  pl.BlockSpec((TN * B, MSG_DIM), lambda i: (i, 0))]
                 + [_const_spec(a) for a in fdyn_args],
        out_specs=pl.BlockSpec((TN * B, OUT_PAD), lambda i: (i, 0)),
        compiler_params=params(("parallel",)),
    )(dyn_rows, agg_rows, *fdyn_args)

    delta = jnp.transpose(delta_flat.reshape(N_pad, B, OUT_PAD), (1, 0, 2))
    return delta[:, :N, :DELTA_DIM]


# --------------------------------------------------------------------------
# Pure-JAX reference mirroring the kernel's bf16-in / f32-accumulate numerics
# --------------------------------------------------------------------------
def _mlp_ref(x, ws, bs):
    out = x
    for i, (w, b) in enumerate(zip(ws, bs)):
        out = jnp.dot(out.astype(jnp.bfloat16), w.astype(jnp.bfloat16),
                      preferred_element_type=jnp.float32) + b[0]
        if i < len(ws) - 1:
            out = jnp.maximum(out, 0.0)
    return out


def interaction_network_ref(dyn_feats, rel_feats, senders, receivers,
                            frel_w, frel_b, fdyn_w, fdyn_b):
    del senders
    B, N, _ = dyn_feats.shape
    E = rel_feats.shape[1]
    msg = _mlp_ref(rel_feats.reshape(-1, REL_IN), frel_w, frel_b)
    msg = msg.reshape(B, E, MSG_DIM)
    msg = msg.astype(jnp.bfloat16).astype(jnp.float32)   # kernel stores msg bf16
    agg = jnp.zeros((B, N, MSG_DIM), jnp.float32).at[:, receivers, :].add(msg)
    dyn_in = jnp.concatenate([dyn_feats, agg], axis=-1)
    return _mlp_ref(dyn_in, fdyn_w, fdyn_b)


# --------------------------------------------------------------------------
if __name__ == "__main__":
    key = jax.random.PRNGKey(0)
    k_frel, k_fdyn, k_dyn, k_rel, k_recv = jax.random.split(key, 5)

    B, N, E = 2, 8, 8
    frel_w, frel_b = make_mlp_params(k_frel, REL_IN, MSG_DIM)
    fdyn_w, fdyn_b = make_mlp_params(k_fdyn, DYN_IN + MSG_DIM, DELTA_DIM)

    dyn_feats = jax.random.normal(k_dyn, (B, N, DYN_IN), jnp.float32)
    rel_feats = jax.random.normal(k_rel, (B, E, REL_IN), jnp.float32)
    receivers = jax.random.randint(k_recv, (E,), 0, N, jnp.int32)
    senders = jnp.zeros((E,), jnp.int32)  # unused by the forward

    delta = interaction_network(dyn_feats, rel_feats, senders, receivers,
                                frel_w, frel_b, fdyn_w, fdyn_b)
    delta = jax.block_until_ready(delta)

    ref = interaction_network_ref(dyn_feats, rel_feats, senders, receivers,
                                  frel_w, frel_b, fdyn_w, fdyn_b)
    assert delta.shape == (B, N, DELTA_DIM)
    assert jnp.allclose(delta, ref, atol=5e-3, rtol=5e-3), \
        "mismatch vs JAX reference"
    print("KERNEL_OK")
</pallas_src>

<mosaic_0001>
module attributes {stable_mosaic.version = 11 : i64} {
  func.func @_frel_kernel(%arg0: i32, %arg1: memref<16x12xbf16, #tpu.memory_space<vmem>>, %arg2: memref<12x128xbf16, #tpu.memory_space<vmem>>, %arg3: memref<1x128xf32, #tpu.memory_space<vmem>>, %arg4: memref<128x64xbf16, #tpu.memory_space<vmem>>, %arg5: memref<1x64xf32, #tpu.memory_space<vmem>>, %arg6: memref<64x32xbf16, #tpu.memory_space<vmem>>, %arg7: memref<1x32xf32, #tpu.memory_space<vmem>>, %arg8: memref<32x16xbf16, #tpu.memory_space<vmem>>, %arg9: memref<1x16xf32, #tpu.memory_space<vmem>>, %arg10: memref<16x16xbf16, #tpu.memory_space<vmem>>, %arg11: memref<1x16xf32, #tpu.memory_space<vmem>>, %arg12: memref<16x16xbf16, #tpu.memory_space<vmem>>) attributes {dimension_semantics = [#tpu.dimension_semantics<parallel>], iteration_bounds = array<i64: 1>, scalar_prefetch = 0 : i64, scratch_operands = 0 : i64, tpu.core_type = #tpu.core_type<tc>, window_params = [{transform_indices = @transform_0, window_bounds = array<i64: 16, 12>}, {pipeline_mode = #tpu.pipeline_mode<synchronous>, transform_indices = @transform_1, window_bounds = array<i64: 12, 128>}, {pipeline_mode = #tpu.pipeline_mode<synchronous>, transform_indices = @transform_2, window_bounds = array<i64: 1, 128>}, {pipeline_mode = #tpu.pipeline_mode<synchronous>, transform_indices = @transform_3, window_bounds = array<i64: 128, 64>}, {pipeline_mode = #tpu.pipeline_mode<synchronous>, transform_indices = @transform_4, window_bounds = array<i64: 1, 64>}, {pipeline_mode = #tpu.pipeline_mode<synchronous>, transform_indices = @transform_5, window_bounds = array<i64: 64, 32>}, {pipeline_mode = #tpu.pipeline_mode<synchronous>, transform_indices = @transform_6, window_bounds = array<i64: 1, 32>}, {pipeline_mode = #tpu.pipeline_mode<synchronous>, transform_indices = @transform_7, window_bounds = array<i64: 32, 16>}, {pipeline_mode = #tpu.pipeline_mode<synchronous>, transform_indices = @transform_8, window_bounds = array<i64: 1, 16>}, {pipeline_mode = #tpu.pipeline_mode<synchronous>, transform_indices = @transform_9, window_bounds = array<i64: 16, 16>}, {pipeline_mode = #tpu.pipeline_mode<synchronous>, transform_indices = @transform_10, window_bounds = array<i64: 1, 16>}, {transform_indices = @transform_11, window_bounds = array<i64: 16, 16>}]} {
    %c0 = arith.constant 0 : index
    %c0_0 = arith.constant 0 : index
    %0 = vector.load %arg1[%c0, %c0_0] : memref<16x12xbf16, #tpu.memory_space<vmem>>, vector<16x12xbf16>
    %c0_1 = arith.constant 0 : index
    %c0_2 = arith.constant 0 : index
    %1 = vector.load %arg2[%c0_1, %c0_2] : memref<12x128xbf16, #tpu.memory_space<vmem>>, vector<12x128xbf16>
    %cst = arith.constant dense<0.000000e+00> : vector<16x128xf32>
    %2 = tpu.matmul %0, %1, %cst {dimension_numbers = #tpu.dot_dimension_numbers<[1], [0], [0], [1], [0, 0, 1, 1], [], []>} : vector<16x12xbf16>, vector<12x128xbf16>, vector<16x128xf32> -> vector<16x128xf32>
    %c0_3 = arith.constant 0 : index
    %c0_4 = arith.constant 0 : index
    %3 = vector.load %arg3[%c0_3, %c0_4] : memref<1x128xf32, #tpu.memory_space<vmem>>, vector<1x128xf32>
    %4 = vector.broadcast %3 : vector<1x128xf32> to vector<16x128xf32>
    %5 = arith.addf %2, %4 : vector<16x128xf32>
    %cst_5 = arith.constant 0.000000e+00 : f32
    %6 = vector.broadcast %cst_5 : f32 to vector<16x128xf32>
    %7 = arith.maximumf %5, %6 : vector<16x128xf32>
    %8 = arith.truncf %7 : vector<16x128xf32> to vector<16x128xbf16>
    %c0_6 = arith.constant 0 : index
    %c0_7 = arith.constant 0 : index
    %9 = vector.load %arg4[%c0_6, %c0_7] : memref<128x64xbf16, #tpu.memory_space<vmem>>, vector<128x64xbf16>
    %cst_8 = arith.constant dense<0.000000e+00> : vector<16x64xf32>
    %10 = tpu.matmul %8, %9, %cst_8 {dimension_numbers = #tpu.dot_dimension_numbers<[1], [0], [0], [1], [0, 0, 1, 1], [], []>} : vector<16x128xbf16>, vector<128x64xbf16>, vector<16x64xf32> -> vector<16x64xf32>
    %c0_9 = arith.constant 0 : index
    %c0_10 = arith.constant 0 : index
    %11 = vector.load %arg5[%c0_9, %c0_10] : memref<1x64xf32, #tpu.memory_space<vmem>>, vector<1x64xf32>
    %12 = vector.broadcast %11 : vector<1x64xf32> to vector<16x64xf32>
    %13 = arith.addf %10, %12 : vector<16x64xf32>
    %cst_11 = arith.constant 0.000000e+00 : f32
    %14 = vector.broadcast %cst_11 : f32 to vector<16x64xf32>
    %15 = arith.maximumf %13, %14 : vector<16x64xf32>
    %16 = arith.truncf %15 : vector<16x64xf32> to vector<16x64xbf16>
    %c0_12 = arith.constant 0 : index
    %c0_13 = arith.constant 0 : index
    %17 = vector.load %arg6[%c0_12, %c0_13] : memref<64x32xbf16, #tpu.memory_space<vmem>>, vector<64x32xbf16>
    %cst_14 = arith.constant dense<0.000000e+00> : vector<16x32xf32>
    %18 = tpu.matmul %16, %17, %cst_14 {dimension_numbers = #tpu.dot_dimension_numbers<[1], [0], [0], [1], [0, 0, 1, 1], [], []>} : vector<16x64xbf16>, vector<64x32xbf16>, vector<16x32xf32> -> vector<16x32xf32>
    %c0_15 = arith.constant 0 : index
    %c0_16 = arith.constant 0 : index
    %19 = vector.load %arg7[%c0_15, %c0_16] : memref<1x32xf32, #tpu.memory_space<vmem>>, vector<1x32xf32>
    %20 = vector.broadcast %19 : vector<1x32xf32> to vector<16x32xf32>
    %21 = arith.addf %18, %20 : vector<16x32xf32>
    %cst_17 = arith.constant 0.000000e+00 : f32
    %22 = vector.broadcast %cst_17 : f32 to vector<16x32xf32>
    %23 = arith.maximumf %21, %22 : vector<16x32xf32>
    %24 = arith.truncf %23 : vector<16x32xf32> to vector<16x32xbf16>
    %c0_18 = arith.constant 0 : index
    %c0_19 = arith.constant 0 : index
    %25 = vector.load %arg8[%c0_18, %c0_19] : memref<32x16xbf16, #tpu.memory_space<vmem>>, vector<32x16xbf16>
    %cst_20 = arith.constant dense<0.000000e+00> : vector<16x16xf32>
    %26 = tpu.matmul %24, %25, %cst_20 {dimension_numbers = #tpu.dot_dimension_numbers<[1], [0], [0], [1], [0, 0, 1, 1], [], []>} : vector<16x32xbf16>, vector<32x16xbf16>, vector<16x16xf32> -> vector<16x16xf32>
    %c0_21 = arith.constant 0 : index
    %c0_22 = arith.constant 0 : index
    %27 = vector.load %arg9[%c0_21, %c0_22] : memref<1x16xf32, #tpu.memory_space<vmem>>, vector<1x16xf32>
    %28 = vector.broadcast %27 : vector<1x16xf32> to vector<16x16xf32>
    %29 = arith.addf %26, %28 : vector<16x16xf32>
    %cst_23 = arith.constant 0.000000e+00 : f32
    %30 = vector.broadcast %cst_23 : f32 to vector<16x16xf32>
    %31 = arith.maximumf %29, %30 : vector<16x16xf32>
    %32 = arith.truncf %31 : vector<16x16xf32> to vector<16x16xbf16>
    %c0_24 = arith.constant 0 : index
    %c0_25 = arith.constant 0 : index
    %33 = vector.load %arg10[%c0_24, %c0_25] : memref<16x16xbf16, #tpu.memory_space<vmem>>, vector<16x16xbf16>
    %cst_26 = arith.constant dense<0.000000e+00> : vector<16x16xf32>
    %34 = tpu.matmul %32, %33, %cst_26 {dimension_numbers = #tpu.dot_dimension_numbers<[1], [0], [0], [1], [0, 0, 1, 1], [], []>} : vector<16x16xbf16>, vector<16x16xbf16>, vector<16x16xf32> -> vector<16x16xf32>
    %c0_27 = arith.constant 0 : index
    %c0_28 = arith.constant 0 : index
    %35 = vector.load %arg11[%c0_27, %c0_28] : memref<1x16xf32, #tpu.memory_space<vmem>>, vector<1x16xf32>
    %36 = vector.broadcast %35 : vector<1x16xf32> to vector<16x16xf32>
    %37 = arith.addf %34, %36 : vector<16x16xf32>
    %38 = arith.truncf %37 : vector<16x16xf32> to vector<16x16xbf16>
    %c0_29 = arith.constant 0 : index
    %c0_30 = arith.constant 0 : index
    %39 = vector.load %arg12[%c0_29, %c0_30] : memref<16x16xbf16, #tpu.memory_space<vmem>>, vector<16x16xbf16>
    tpu.vector_store %arg12[%c0_29, %c0_30], %38 {strides = array<i32>} : memref<16x16xbf16, #tpu.memory_space<vmem>>, vector<16x16xbf16>,
    return
  }
  func.func @transform_0(%arg0: i32) -> (i32, i32) {
    %c0_i32 = arith.constant 0 : i32
    %c0_i32_0 = arith.constant 0 : i32
    return %arg0, %c0_i32 : i32, i32
  }
  func.func @transform_1(%arg0: i32) -> (i32, i32) {
    %c0_i32 = arith.constant 0 : i32
    %c0_i32_0 = arith.constant 0 : i32
    %c0_i32_1 = arith.constant 0 : i32
    return %c0_i32, %c0_i32_0 : i32, i32
  }
  func.func @transform_2(%arg0: i32) -> (i32, i32) {
    %c0_i32 = arith.constant 0 : i32
    %c0_i32_0 = arith.constant 0 : i32
    %c0_i32_1 = arith.constant 0 : i32
    return %c0_i32, %c0_i32_0 : i32, i32
  }
  func.func @transform_3(%arg0: i32) -> (i32, i32) {
    %c0_i32 = arith.constant 0 : i32
    %c0_i32_0 = arith.constant 0 : i32
    %c0_i32_1 = arith.constant 0 : i32
    return %c0_i32, %c0_i32_0 : i32, i32
  }
  func.func @transform_4(%arg0: i32) -> (i32, i32) {
    %c0_i32 = arith.constant 0 : i32
    %c0_i32_0 = arith.constant 0 : i32
    %c0_i32_1 = arith.constant 0 : i32
    return %c0_i32, %c0_i32_0 : i32, i32
  }
  func.func @transform_5(%arg0: i32) -> (i32, i32) {
    %c0_i32 = arith.constant 0 : i32
    %c0_i32_0 = arith.constant 0 : i32
    %c0_i32_1 = arith.constant 0 : i32
    return %c0_i32, %c0_i32_0 : i32, i32
  }
  func.func @transform_6(%arg0: i32) -> (i32, i32) {
    %c0_i32 = arith.constant 0 : i32
    %c0_i32_0 = arith.constant 0 : i32
    %c0_i32_1 = arith.constant 0 : i32
    return %c0_i32, %c0_i32_0 : i32, i32
  }
  func.func @transform_7(%arg0: i32) -> (i32, i32) {
    %c0_i32 = arith.constant 0 : i32
    %c0_i32_0 = arith.constant 0 : i32
    %c0_i32_1 = arith.constant 0 : i32
    return %c0_i32, %c0_i32_0 : i32, i32
  }
  func.func @transform_8(%arg0: i32) -> (i32, i32) {
    %c0_i32 = arith.constant 0 : i32
    %c0_i32_0 = arith.constant 0 : i32
    %c0_i32_1 = arith.constant 0 : i32
    return %c0_i32, %c0_i32_0 : i32, i32
  }
  func.func @transform_9(%arg0: i32) -> (i32, i32) {
    %c0_i32 = arith.constant 0 : i32
    %c0_i32_0 = arith.constant 0 : i32
    %c0_i32_1 = arith.constant 0 : i32
    return %c0_i32, %c0_i32_0 : i32, i32
  }
  func.func @transform_10(%arg0: i32) -> (i32, i32) {
    %c0_i32 = arith.constant 0 : i32
    %c0_i32_0 = arith.constant 0 : i32
    %c0_i32_1 = arith.constant 0 : i32
    return %c0_i32, %c0_i32_0 : i32, i32
  }
  func.func @transform_11(%arg0: i32) -> (i32, i32) {
    %c0_i32 = arith.constant 0 : i32
    %c0_i32_0 = arith.constant 0 : i32
    return %arg0, %c0_i32 : i32, i32
  }
}

</mosaic_0001>

<bundles_post_ra>
// kernel: tpu_custom_call.1
= control target key start
LH: loop header
LB: loop body
LE: loop exit
PB: predicated region body
PF: predicated region fallthrough
CT: control target
= control target key end

     0   :  { %vm65_vm0 = vcmask 1045504   ;;  %v620_v0 = vmov 0.0   ;;  %vm621_vm1 = vmmov 0   ;;  %vm61_vm2 = vcmask 97280   ;;  %s780_s0 = inlined_call_operand.vmem [shape: bf16[16,12], index: 0, kind: input, shape index: {}]   ;;  %s781_s1 = inlined_call_operand.vmem [shape: bf16[12,128], index: 1, kind: input, shape index: {}]   ;;  %s782_s2 = inlined_call_operand.vmem [shape: f32[1,128], index: 2, kind: input, shape index: {}]   ;;  %s783_s3 = inlined_call_operand.vmem [shape: bf16[128,64], index: 3, kind: input, shape index: {}]   ;;  %s784_s4 = inlined_call_operand.vmem [shape: f32[1,64], index: 4, kind: input, shape index: {}]   ;;  %s785_s5 = inlined_call_operand.vmem [shape: bf16[64,32], index: 5, kind: input, shape index: {}]   ;;  %s786_s6 = inlined_call_operand.vmem [shape: f32[1,32], index: 6, kind: input, shape index: {}]   ;;  %s787_s7 = inlined_call_operand.vmem [shape: bf16[32,16], index: 7, kind: input, shape index: {}]   ;;  %s788_s8 = inlined_call_operand.vmem [shape: f32[1,16], index: 8, kind: input, shape index: {}]   ;;  %s789_s9 = inlined_call_operand.vmem [shape: bf16[16,16], index: 9, kind: input, shape index: {}]   ;;  %s790_s10 = inlined_call_operand.vmem [shape: f32[1,16], index: 10, kind: input, shape index: {}]   ;;  %s791_s11 = inlined_call_operand.hbm [shape: bf16[16,16], index: 11, kind: output, shape index: {}]  }
   0x1   :  { %524 = vmatprep.subr.bf16.mxu0 %v620_v0  ;;  %v581_v1 = vld [vmem:[%s781_s1] sm:$0x3f]   ;;  %530 = vmatprep.subr.bf16.mxu1 %v620_v0  ;;  %v583_v3 = vld [vmem:[%s783_s3 + $0x38] sm:$0xff]   ;;  %v584_v5 = vld [vmem:[%s783_s3 + $0x30] sm:$0xff]  }
   0x2   :  { %v582_v2 = vld [vmem:[%s780_s0] sm:$0xff]   ;;  %526 = vmatprep.mubr.msk.bf16.mxu0 %vm621_vm1, %v620_v0  ;;  %546 = vmatprep.mubr.msk.bf16.mxu1 %vm621_vm1, %v620_v0  ;;  %v67_v4 = vsel %vm65_vm0, %v581_v1, 0  ;;  %v585_v6 = vld [vmem:[%s783_s3 + $0x28] sm:$0xff]  }
   0x3   :  { %525 = vmatpush3.bf16.msra.mxu0 %v67_v4  ;;  %531 = vmatpush3.bf16.msra.mxu1 %v583_v3  ;;  %v586_v7 = vld [vmem:[%s783_s3 + $0x20] sm:$0xff]  }
   0x4   :  { %532 = vmatprep.subr.bf16.mxu1 %v620_v0  ;;  %550 = vmatprep.subr.bf16.mxu0 %v620_v0 }
   0x6   :  { %527 = vmatmul.mubr.msk.bf16.vlgmr.msra.gmra.mxu0 %vm61_vm2, %v582_v2 }
   0x7   :  { %533 = vmatpush3.bf16.msra.mxu1 %v584_v5  ;;  %558 = vmatprep.mubr.msk.bf16.mxu0 %vm621_vm1, %v620_v0 }
   0x8   :  { %534 = vmatprep.subr.bf16.mxu1 %v620_v0 }
   0xb   :  { %535 = vmatpush3.bf16.msra.mxu1 %v585_v6 }
   0xc   :  { %536 = vmatprep.subr.bf16.mxu1 %v620_v0 }
   0xd   :  { %16 = vsyncpa [#allocation3], 0  ;;  %v587_v8 = vld [vmem:[%s783_s3 + $0x18] sm:$0xff]   ;;  %v588_v9 = vld [vmem:[%s783_s3 + $0x10] sm:$0xff]   ;;  %vm267_vm3 = vcmask 523264   ;;  %vm338_vm4 = vcmask 261120  }
   0xe   :  { %v589_v10 = vld [vmem:[%s783_s3 + $0x8] sm:$0xff]   ;;  %v590_v11 = vld [vmem:[%s783_s3] sm:$0xff]   ;;  %v591_v12 = vld [vmem:[%s785_s5 + $0x18] sm:$0xff]   ;;  %vm401_vm5 = vcmask 130048   ;;  %vm454_vm6 = vcmask 125952  }
   0xf   :  { %537 = vmatpush3.bf16.msra.mxu1 %v586_v7  ;;  %551 = vmatpush3.bf16.msra.mxu0 %v591_v12  ;;  %v473_v13 = vld [vmem:[%s782_s2] ss:$0 sm:$0xff]  ;;  %v592_v23 = vld [vmem:[%s785_s5 + $0x10] sm:$0xff]   ;;  %v593_v24 = vld [vmem:[%s785_s5 + $0x8] sm:$0xff]  }
  0x10   :  { %538 = vmatprep.subr.bf16.mxu1 %v620_v0  ;;  %552 = vmatprep.subr.bf16.mxu0 %v620_v0  ;;  %v594_v25 = vld [vmem:[%s785_s5] sm:$0xff]   ;;  %v595_v36 = vld [vmem:[%s787_s7 + $0x8] sm:$0xff]  }
  0x11   :  { %v477_v26 = vld [vmem:[%s784_s4] ss:$0 sm:$0xff] }
  0x12   :  { %v596_v37 = vld [vmem:[%s787_s7] sm:$0xff]  }
  0x13   :  { %539 = vmatpush3.bf16.msra.mxu1 %v587_v8  ;;  %553 = vmatpush3.bf16.msra.mxu0 %v592_v23  ;;  %v486_v38 = vld [vmem:[%s786_s6] ss:$0 sm:$0xff] }
  0x14   :  { %540 = vmatprep.subr.bf16.mxu1 %v620_v0  ;;  %554 = vmatprep.subr.bf16.mxu0 %v620_v0  ;;  %v597_v48 = vld [vmem:[%s789_s9] sm:$0xff]  }
  0x15   :  { %v492_v49 = vld [vmem:[%s788_s8] ss:$0 sm:$0xff]  ;;  %s622_s8 = smov [#allocation2]  }
  0x16   :  { %v496_v59 = vld [vmem:[%s790_s10] ss:$0 sm:$0xff]  ;;  %s462_s9 = sshll.u32 %s622_s8, 4  ;;  %s463_s9 = int_to_ptr.vmem [resolvable:$true] %s462_s9 }
  0x17   :  { %541 = vmatpush3.bf16.msra.mxu1 %v588_v9  ;;  %555 = vmatpush3.bf16.msra.mxu0 %v593_v24  ;;  %s598_s13 = scalar_lea.vmem %s463_s9, 128  ;;  %p603_p1 = scmp.lt.s32.totalorder %s463_s9, %s463_s9 }
  0x18   :  { %542 = vmatprep.subr.bf16.mxu1 %v620_v0  ;;  %556 = vmatprep.subr.bf16.mxu0 %v620_v0  ;;  %p599_p0 = scmp.ne.s32.totalorder %s463_s9, %s598_s13  ;;  %p604_p2 = scmp.lt.s32.totalorder %s598_s13, %s598_s13 }
  0x1a   :  { %p605_p3 = por %p604_p2, %p603_p1 }
  0x1b   :  { %543 = vmatpush3.bf16.msra.mxu1 %v589_v10  ;;  %557 = vmatpush3.bf16.msra.mxu0 %v594_v25 }
  0x1c   :  { %544 = vmatprep.subr.bf16.mxu1 %v620_v0  ;;  %562 = vmatprep.subr.bf16.mxu0 %v620_v0  ;;  %p606_p4 = pnand %p605_p3, %p599_p0 }
  0x1f   :  { %545 = vmatpush3.bf16.msra.mxu1 %v590_v11 }
  0xc6   :  { %v103_v14 = vpop.f32.mrf.mxu0 }
  0xc7   :  { %v104_v16 = vadd.f32 %v473_v13, %v103_v14 }
  0xc8   :  { %v528_v15 = vpop.f32.mrf.mxu0 }
  0xc9   :  { %v110_v20 = vmax.f32 %v104_v16, 0.0 }
  0xca   :  { %v106_v17 = vpop.f32.mrf.mxu0 }
  0xcb   :  { %v107_v18 = vadd.f32 %v473_v13, %v106_v17 }
  0xcc   :  { %v529_v19 = vpop.f32.mrf.mxu0 }
  0xcd   :  { %v111_v21 = vmax.f32 %v107_v18, 0.0 }
  0xcf   :  { %v112_v22 = vpack.c.bf16 %v111_v21, %v110_v20 }
  0xd1   :  { %547 = vmatmul.mubr.bf16.vlgmr.msra.gmra.mxu1 %v112_v22 }
 0x191   :  { %v218_v27 = vpop.f32.mrf.mxu1 }
 0x192   :  { %v219_v29 = vadd.f32 %v477_v26, %v218_v27 }
 0x193   :  { %v548_v28 = vpop.f32.mrf.mxu1 }
 0x194   :  { %v225_v33 = vmax.f32 %v219_v29, 0.0 }
 0x195   :  { %v221_v30 = vpop.f32.mrf.mxu1 }
 0x196   :  { %v222_v31 = vadd.f32 %v477_v26, %v221_v30 }
 0x197   :  { %v549_v32 = vpop.f32.mrf.mxu1 }
 0x198   :  { %v226_v34 = vmax.f32 %v222_v31, 0.0 }
 0x19a   :  { %v227_v35 = vpack.c.bf16 %v226_v34, %v225_v33 }
 0x19c   :  { %559 = vmatmul.mubr.msk.bf16.vlgmr.msra.gmra.mxu0 %vm267_vm3, %v227_v35 }
 0x19d   :  { %566 = vmatprep.mubr.msk.bf16.mxu0 %vm621_vm1, %v620_v0  ;;  %563 = vmatpush3.bf16.msra.mxu0 %v595_v36 }
 0x19e   :  { %564 = vmatprep.subr.bf16.mxu0 %v620_v0 }
 0x1a1   :  { %565 = vmatpush3.bf16.msra.mxu0 %v596_v37 }
 0x1a2   :  { %570 = vmatprep.subr.bf16.mxu0 %v620_v0 }
 0x25c   :  { %v305_v39 = vpop.f32.mrf.mxu0 }
 0x25d   :  { %v306_v41 = vadd.f32 %v486_v38, %v305_v39 }
 0x25e   :  { %v560_v40 = vpop.f32.mrf.mxu0 }
 0x25f   :  { %v312_v45 = vmax.f32 %v306_v41, 0.0 }
 0x260   :  { %v308_v42 = vpop.f32.mrf.mxu0 }
 0x261   :  { %v309_v43 = vadd.f32 %v486_v38, %v308_v42 }
 0x262   :  { %v561_v44 = vpop.f32.mrf.mxu0 }
 0x263   :  { %v313_v46 = vmax.f32 %v309_v43, 0.0 }
 0x265   :  { %v314_v47 = vpack.c.bf16 %v313_v46, %v312_v45 }
 0x267   :  { %567 = vmatmul.mubr.msk.bf16.vlgmr.msra.gmra.mxu0 %vm338_vm4, %v314_v47 }
 0x268   :  { %572 = vmatprep.mubr.msk.bf16.mxu0 %vm621_vm1, %v620_v0  ;;  %571 = vmatpush3.bf16.msra.mxu0 %v597_v48 }
 0x327   :  { %v376_v50 = vpop.f32.mrf.mxu0 }
 0x328   :  { %v377_v52 = vadd.f32 %v492_v49, %v376_v50 }
 0x329   :  { %v568_v51 = vpop.f32.mrf.mxu0 }
 0x32a   :  { %v383_v56 = vmax.f32 %v377_v52, 0.0 }
 0x32b   :  { %v379_v53 = vpop.f32.mrf.mxu0 }
 0x32c   :  { %v380_v54 = vadd.f32 %v492_v49, %v379_v53 }
 0x32d   :  { %v569_v55 = vpop.f32.mrf.mxu0 }
 0x32e   :  { %v384_v57 = vmax.f32 %v380_v54, 0.0 }
 0x330   :  { %v385_v58 = vpack.c.bf16 %v384_v57, %v383_v56 }
 0x332   :  { %573 = vmatmul.mubr.msk.bf16.vlgmr.msra.gmra.mxu0 %vm401_vm5, %v385_v58 }
 0x3f2   :  { %v439_v60 = vpop.f32.mrf.mxu0 }
 0x3f3   :  { %v440_v61 = vadd.f32 %v496_v59, %v439_v60 }
 0x3f4   :  { %v574_v62 = vpop.f32.mrf.mxu0 }
 0x3f5   :  { %v501_v63 = vpack.c.bf16 %v440_v61, %v440_v61 }
 0x3f6   :  { %v442_v0 = vpop.f32.mrf.mxu0 }
 0x3f7   :  { %455 = vst.msk [vmem:[#allocation2] sm:$0xf] %vm454_vm6, %v501_v63  ;;  %v443_v1 = vadd.f32 %v496_v59, %v442_v0 }
 0x3f8   :  { %v575_v2 = vpop.f32.mrf.mxu0 }
 0x3f9   :  { %v502_v3 = vpack.c.bf16 %v443_v1, %v443_v1 }
 0x3fb   :  { %456 = vst.msk [vmem:[#allocation2 + $0x4] sm:$0xf] %vm454_vm6, %v502_v3 }
 0x3fc   :  { %609 = shalt.err (!%p606_p4)
}
 0x3fd   :  { %s623_s10 = smov 64   ;;  %s624_s14 = smov 4  }
 0x3fe   :  { %468 = dma.vmem_to_hbm [thread:$0]  %s463_s9, 128, %s791_s11, [#allocation3], %s623_s10, %s623_s10, %s624_s14  }
 0x3ff   :  { %618 = dma.done.wait [#allocation3], 128  }
 0x400   :  { %619 = vsyncadd [#allocation3], 4294967168 }
 0x401   :  { %472 = vsyncpa [#allocation3], 1 }

</bundles_post_ra>
